<compile_context>
chip_gen: v7x
topology: tpu7x:2x2x1
jax: 0.10.0
libtpu: 0.0.40
codegen_flags: <defaults>
</compile_context>

<pallas_src>
import functools
import math

import jax
import jax.numpy as jnp
from jax.experimental import pallas as pl
from jax.experimental.pallas import tpu as pltpu


def _round_up(x, m):
    return (x + m - 1) // m * m


# ----------------------------------------------------------------------------
# EqualLinear modulation (plain XLA: ~4 KFLOP GEMV, not worth a pallas_call)
# ----------------------------------------------------------------------------
def equal_linear_modulation(style, w_mod, b_mod, lr_mul=1.0):
    style_dim = w_mod.shape[1]
    scale_lin = (1.0 / math.sqrt(style_dim)) * lr_mul
    return (style.astype(jnp.float32)
            @ (w_mod.astype(jnp.float32) * scale_lin).T
            + (b_mod.astype(jnp.float32) * lr_mul))


# ----------------------------------------------------------------------------
# Kernel: per (batch, Cout-tile) block, accumulate k*k taps as depth-Cin MXU dots
# ----------------------------------------------------------------------------
def _modconv_tap_kernel(x_ref, w_ref, s_ref, o_ref, *, k, wp, nw_pad):
    # x_ref: (1, Cin, Lx)      flat zero-padded image, row stride wp (compute dtype)
    # w_ref: (k*k, CoT, Cin)   pre-scaled base weight, tap-major, f32
    # s_ref: (1, 1, Cin)       per-batch modulation, f32
    # o_ref: (1, CoT, nw_pad)  lane-dense "wide" output (pad columns included)
    s = s_ref[0]                                            # (1, Cin) f32
    acc = jnp.zeros(o_ref.shape[1:], jnp.float32)           # (CoT, nw_pad) f32
    for kh in range(k):
        for kw in range(k):
            t = kh * k + kw
            d = kh * wp + kw                                # static tap shift
            # Modulation multiply in f32 (tile-sized temp), cast right before dot.
            a_tap = (w_ref[t] * s).astype(x_ref.dtype)      # (CoT, Cin)
            xb = x_ref[0, :, d:d + nw_pad]                  # (Cin, nw_pad)
            acc = acc + jnp.dot(a_tap, xb,
                                preferred_element_type=jnp.float32)
    o_ref[0] = acc.astype(o_ref.dtype)


def modulated_conv2d(x, weight, style_mod, scale, k, *,
                     compute_dtype=jnp.bfloat16, cout_tile=None,
                     vmem_limit_bytes=None):
    """x: (B, Cin, H, W); weight: (1, Cout, Cin, k, k); style_mod: (B, Cin)."""
    B, Cin, H, W = x.shape
    Cout = weight.shape[1]
    pad = k // 2
    Hp, Wp = H + 2 * pad, W + 2 * pad

    nw = H * Wp                        # "wide" output length (pad cols kept per row)
    nw_pad = _round_up(nw, 128)        # lane-dense output (unmasked stores)
    max_d = (k - 1) * (Wp + 1)         # largest static tap shift
    lx = _round_up(nw_pad + max_d, 128)

    # Flat zero-padded input slab (B, Cin, lx) — ~1.1x of x, NOT a 9x im2col slab.
    xp = jnp.pad(x, ((0, 0), (0, 0), (pad, pad), (pad, pad)))
    xf = xp.reshape(B, Cin, Hp * Wp)
    xf = jnp.pad(xf, ((0, 0), (0, 0), (0, lx - Hp * Wp))).astype(compute_dtype)

    # Pre-scaled base weight, tap-major: (k*k, Cout, Cin), kept f32 (modulation in f32).
    w_t = (scale * weight[0].astype(jnp.float32)).transpose(2, 3, 0, 1)
    w_t = w_t.reshape(k * k, Cout, Cin)

    s3 = style_mod.astype(jnp.float32).reshape(B, 1, Cin)

    if cout_tile is None:
        cout_tile = min(256, Cout)     # v5e: use 128; v6e/v7x: 256+ fills the MXU
    cout_tile = min(cout_tile, Cout)
    if Cout % cout_tile != 0:
        cout_tile = Cout
    n_co = Cout // cout_tile

    kernel = functools.partial(_modconv_tap_kernel, k=k, wp=Wp, nw_pad=nw_pad)

    out_wide = pl.pallas_call(
        kernel,
        out_shape=jax.ShapeDtypeStruct((B, Cout, nw_pad), x.dtype),
        grid_spec=pl.GridSpec(
            grid=(B, n_co),            # Cout innermost: x block stays VMEM-resident
            in_specs=[
                pl.BlockSpec((1, Cin, lx), lambda b, co: (b, 0, 0)),
                pl.BlockSpec((k * k, cout_tile, Cin), lambda b, co: (0, co, 0)),
                pl.BlockSpec((1, 1, Cin), lambda b, co: (b, 0, 0)),
            ],
            out_specs=pl.BlockSpec((1, cout_tile, nw_pad), lambda b, co: (b, co, 0)),
        ),
        compiler_params=pltpu.CompilerParams(
            dimension_semantics=("parallel", "parallel"),
            vmem_limit_bytes=vmem_limit_bytes,
        ),
    )(xf, w_t, s3)

    # Drop the lane padding, then the pad columns of each wide row.
    out = out_wide[:, :, :nw].reshape(B, Cout, H, Wp)[:, :, :, :W]
    return out


# ----------------------------------------------------------------------------
# Full module forward (upsample=False, downsample=False path)
# ----------------------------------------------------------------------------
def modulated_conv2d_forward(x, style, params, *, kernel_size,
                             compute_dtype=jnp.bfloat16, cout_tile=None,
                             vmem_limit_bytes=None):
    B, in_channel = x.shape[0], x.shape[1]
    if style is not None:
        style_mod = equal_linear_modulation(
            style, params["mod_weight"], params["mod_bias"])         # (B, Cin)
        scale = 1.0 / math.sqrt(in_channel * kernel_size ** 2)
    else:
        # Module's style=None branch: weight * ones, WITHOUT self.scale.
        style_mod = jnp.ones((B, in_channel), jnp.float32)
        scale = 1.0
    return modulated_conv2d(x, params["weight"], style_mod, scale, kernel_size,
                            compute_dtype=compute_dtype, cout_tile=cout_tile,
                            vmem_limit_bytes=vmem_limit_bytes)


# ----------------------------------------------------------------------------
# Pure-JAX reference (for correctness check)
# ----------------------------------------------------------------------------
def reference_forward(x, style, params, *, kernel_size):
    B, Cin, H, W = x.shape
    weight = params["weight"]                          # (1, Cout, Cin, k, k)
    scale = 1.0 / math.sqrt(Cin * kernel_size ** 2)
    scale_lin = 1.0 / math.sqrt(style.shape[1])
    s = style @ (params["mod_weight"] * scale_lin).T + params["mod_bias"]
    w = scale * weight * s[:, None, :, None, None]     # (B, Cout, Cin, k, k)
    pad = kernel_size // 2
    outs = []
    for b in range(B):
        o = jax.lax.conv_general_dilated(
            x[b:b + 1], w[b],
            window_strides=(1, 1),
            padding=((pad, pad), (pad, pad)),
            dimension_numbers=("NCHW", "OIHW", "NCHW"),
        )
        outs.append(o)
    return jnp.concatenate(outs, axis=0)


if __name__ == "__main__":
    # Small shapes consistent with the module's forward.
    B, Cin, Cout, K, H, W = 2, 4, 8, 3, 16, 16
    STYLE_DIM = 512  # hardcoded in the module: EqualLinear(512, in_channel)

    key = jax.random.PRNGKey(0)
    k1, k2, k3, k4 = jax.random.split(key, 4)

    params = {
        # nn.Parameter(torch.randn(1, out_channel, in_channel, k, k))
        "weight": jax.random.normal(k1, (1, Cout, Cin, K, K), jnp.float32),
        # EqualLinear(512, Cin, bias_init=1): weight randn(Cin, 512), bias ones
        "mod_weight": jax.random.normal(k2, (Cin, STYLE_DIM), jnp.float32),
        "mod_bias": jnp.ones((Cin,), jnp.float32),
    }

    x = jax.random.normal(k3, (B, Cin, H, W), jnp.float32)
    style = jax.random.normal(k4, (B, STYLE_DIM), jnp.float32)

    ref = reference_forward(x, style, params, kernel_size=K)

    # Production path: bf16 MXU compute, f32 modulation + accumulation.
    out_bf16 = modulated_conv2d_forward(x, style, params, kernel_size=K,
                                        compute_dtype=jnp.bfloat16)
    out_bf16 = jax.block_until_ready(out_bf16)
    assert out_bf16.shape == (B, Cout, H, W), out_bf16.shape
    assert jnp.allclose(out_bf16, ref, rtol=5e-2, atol=1e-1), (
        float(jnp.max(jnp.abs(out_bf16 - ref))))

    # f32 compute path: tight numerical check of the tap-accumulation structure.
    out_f32 = modulated_conv2d_forward(x, style, params, kernel_size=K,
                                       compute_dtype=jnp.float32)
    out_f32 = jax.block_until_ready(out_f32)
    assert out_f32.shape == (B, Cout, H, W), out_f32.shape
    assert jnp.allclose(out_f32, ref, rtol=5e-3, atol=5e-3), (
        float(jnp.max(jnp.abs(out_f32 - ref))))

    print("KERNEL_OK")
</pallas_src>

<mosaic_0001>
module attributes {stable_mosaic.version = 11 : i64} {
  func.func @_modconv_tap_kernel(%arg0: i32, %arg1: i32, %arg2: memref<1x4x512xbf16, #tpu.memory_space<vmem>>, %arg3: memref<9x8x4xf32, #tpu.memory_space<vmem>>, %arg4: memref<1x1x4xf32, #tpu.memory_space<vmem>>, %arg5: memref<1x8x384xf32, #tpu.memory_space<vmem>>) attributes {dimension_semantics = [#tpu.dimension_semantics<parallel>, #tpu.dimension_semantics<parallel>], iteration_bounds = array<i64: 2, 1>, scalar_prefetch = 0 : i64, scratch_operands = 0 : i64, tpu.core_type = #tpu.core_type<tc>, window_params = [{transform_indices = @transform_0, window_bounds = array<i64: 1, 4, 512>}, {transform_indices = @transform_1, window_bounds = array<i64: 9, 8, 4>}, {transform_indices = @transform_2, window_bounds = array<i64: 1, 1, 4>}, {transform_indices = @transform_3, window_bounds = array<i64: 1, 8, 384>}]} {
    %c0 = arith.constant 0 : index
    %c0_0 = arith.constant 0 : index
    %c0_1 = arith.constant 0 : index
    %0 = vector.load %arg4[%c0, %c0_0, %c0_1] : memref<1x1x4xf32, #tpu.memory_space<vmem>>, vector<1x1x4xf32>
    %1 = vector.shape_cast %0 : vector<1x1x4xf32> to vector<1x4xf32>
    %cst = arith.constant 0.000000e+00 : f32
    %2 = vector.broadcast %cst : f32 to vector<8x384xf32>
    %c0_2 = arith.constant 0 : index
    %c0_3 = arith.constant 0 : index
    %c0_4 = arith.constant 0 : index
    %3 = vector.load %arg3[%c0_2, %c0_3, %c0_4] : memref<9x8x4xf32, #tpu.memory_space<vmem>>, vector<1x8x4xf32>
    %4 = vector.shape_cast %3 : vector<1x8x4xf32> to vector<8x4xf32>
    %5 = vector.broadcast %1 : vector<1x4xf32> to vector<8x4xf32>
    %6 = arith.mulf %4, %5 : vector<8x4xf32>
    %7 = arith.truncf %6 : vector<8x4xf32> to vector<8x4xbf16>
    %c0_5 = arith.constant 0 : index
    %c0_6 = arith.constant 0 : index
    %c0_7 = arith.constant 0 : index
    %8 = vector.load %arg2[%c0_5, %c0_6, %c0_7] : memref<1x4x512xbf16, #tpu.memory_space<vmem>>, vector<1x4x384xbf16>
    %9 = vector.shape_cast %8 : vector<1x4x384xbf16> to vector<4x384xbf16>
    %cst_8 = arith.constant dense<0.000000e+00> : vector<8x384xf32>
    %10 = tpu.matmul %7, %9, %cst_8 {dimension_numbers = #tpu.dot_dimension_numbers<[1], [0], [0], [1], [0, 0, 1, 1], [], []>} : vector<8x4xbf16>, vector<4x384xbf16>, vector<8x384xf32> -> vector<8x384xf32>
    %11 = arith.addf %2, %10 : vector<8x384xf32>
    %c1 = arith.constant 1 : index
    %c0_9 = arith.constant 0 : index
    %c0_10 = arith.constant 0 : index
    %12 = vector.load %arg3[%c1, %c0_9, %c0_10] : memref<9x8x4xf32, #tpu.memory_space<vmem>>, vector<1x8x4xf32>
    %13 = vector.shape_cast %12 : vector<1x8x4xf32> to vector<8x4xf32>
    %14 = vector.broadcast %1 : vector<1x4xf32> to vector<8x4xf32>
    %15 = arith.mulf %13, %14 : vector<8x4xf32>
    %16 = arith.truncf %15 : vector<8x4xf32> to vector<8x4xbf16>
    %c0_11 = arith.constant 0 : index
    %c0_12 = arith.constant 0 : index
    %c1_13 = arith.constant 1 : index
    %17 = vector.load %arg2[%c0_11, %c0_12, %c1_13] : memref<1x4x512xbf16, #tpu.memory_space<vmem>>, vector<1x4x384xbf16>
    %18 = vector.shape_cast %17 : vector<1x4x384xbf16> to vector<4x384xbf16>
    %cst_14 = arith.constant dense<0.000000e+00> : vector<8x384xf32>
    %19 = tpu.matmul %16, %18, %cst_14 {dimension_numbers = #tpu.dot_dimension_numbers<[1], [0], [0], [1], [0, 0, 1, 1], [], []>} : vector<8x4xbf16>, vector<4x384xbf16>, vector<8x384xf32> -> vector<8x384xf32>
    %20 = arith.addf %11, %19 : vector<8x384xf32>
    %c2 = arith.constant 2 : index
    %c0_15 = arith.constant 0 : index
    %c0_16 = arith.constant 0 : index
    %21 = vector.load %arg3[%c2, %c0_15, %c0_16] : memref<9x8x4xf32, #tpu.memory_space<vmem>>, vector<1x8x4xf32>
    %22 = vector.shape_cast %21 : vector<1x8x4xf32> to vector<8x4xf32>
    %23 = vector.broadcast %1 : vector<1x4xf32> to vector<8x4xf32>
    %24 = arith.mulf %22, %23 : vector<8x4xf32>
    %25 = arith.truncf %24 : vector<8x4xf32> to vector<8x4xbf16>
    %c0_17 = arith.constant 0 : index
    %c0_18 = arith.constant 0 : index
    %c2_19 = arith.constant 2 : index
    %26 = vector.load %arg2[%c0_17, %c0_18, %c2_19] : memref<1x4x512xbf16, #tpu.memory_space<vmem>>, vector<1x4x384xbf16>
    %27 = vector.shape_cast %26 : vector<1x4x384xbf16> to vector<4x384xbf16>
    %cst_20 = arith.constant dense<0.000000e+00> : vector<8x384xf32>
    %28 = tpu.matmul %25, %27, %cst_20 {dimension_numbers = #tpu.dot_dimension_numbers<[1], [0], [0], [1], [0, 0, 1, 1], [], []>} : vector<8x4xbf16>, vector<4x384xbf16>, vector<8x384xf32> -> vector<8x384xf32>
    %29 = arith.addf %20, %28 : vector<8x384xf32>
    %c3 = arith.constant 3 : index
    %c0_21 = arith.constant 0 : index
    %c0_22 = arith.constant 0 : index
    %30 = vector.load %arg3[%c3, %c0_21, %c0_22] : memref<9x8x4xf32, #tpu.memory_space<vmem>>, vector<1x8x4xf32>
    %31 = vector.shape_cast %30 : vector<1x8x4xf32> to vector<8x4xf32>
    %32 = vector.broadcast %1 : vector<1x4xf32> to vector<8x4xf32>
    %33 = arith.mulf %31, %32 : vector<8x4xf32>
    %34 = arith.truncf %33 : vector<8x4xf32> to vector<8x4xbf16>
    %c0_23 = arith.constant 0 : index
    %c0_24 = arith.constant 0 : index
    %c18 = arith.constant 18 : index
    %35 = vector.load %arg2[%c0_23, %c0_24, %c18] : memref<1x4x512xbf16, #tpu.memory_space<vmem>>, vector<1x4x384xbf16>
    %36 = vector.shape_cast %35 : vector<1x4x384xbf16> to vector<4x384xbf16>
    %cst_25 = arith.constant dense<0.000000e+00> : vector<8x384xf32>
    %37 = tpu.matmul %34, %36, %cst_25 {dimension_numbers = #tpu.dot_dimension_numbers<[1], [0], [0], [1], [0, 0, 1, 1], [], []>} : vector<8x4xbf16>, vector<4x384xbf16>, vector<8x384xf32> -> vector<8x384xf32>
    %38 = arith.addf %29, %37 : vector<8x384xf32>
    %c4 = arith.constant 4 : index
    %c0_26 = arith.constant 0 : index
    %c0_27 = arith.constant 0 : index
    %39 = vector.load %arg3[%c4, %c0_26, %c0_27] : memref<9x8x4xf32, #tpu.memory_space<vmem>>, vector<1x8x4xf32>
    %40 = vector.shape_cast %39 : vector<1x8x4xf32> to vector<8x4xf32>
    %41 = vector.broadcast %1 : vector<1x4xf32> to vector<8x4xf32>
    %42 = arith.mulf %40, %41 : vector<8x4xf32>
    %43 = arith.truncf %42 : vector<8x4xf32> to vector<8x4xbf16>
    %c0_28 = arith.constant 0 : index
    %c0_29 = arith.constant 0 : index
    %c19 = arith.constant 19 : index
    %44 = vector.load %arg2[%c0_28, %c0_29, %c19] : memref<1x4x512xbf16, #tpu.memory_space<vmem>>, vector<1x4x384xbf16>
    %45 = vector.shape_cast %44 : vector<1x4x384xbf16> to vector<4x384xbf16>
    %cst_30 = arith.constant dense<0.000000e+00> : vector<8x384xf32>
    %46 = tpu.matmul %43, %45, %cst_30 {dimension_numbers = #tpu.dot_dimension_numbers<[1], [0], [0], [1], [0, 0, 1, 1], [], []>} : vector<8x4xbf16>, vector<4x384xbf16>, vector<8x384xf32> -> vector<8x384xf32>
    %47 = arith.addf %38, %46 : vector<8x384xf32>
    %c5 = arith.constant 5 : index
    %c0_31 = arith.constant 0 : index
    %c0_32 = arith.constant 0 : index
    %48 = vector.load %arg3[%c5, %c0_31, %c0_32] : memref<9x8x4xf32, #tpu.memory_space<vmem>>, vector<1x8x4xf32>
    %49 = vector.shape_cast %48 : vector<1x8x4xf32> to vector<8x4xf32>
    %50 = vector.broadcast %1 : vector<1x4xf32> to vector<8x4xf32>
    %51 = arith.mulf %49, %50 : vector<8x4xf32>
    %52 = arith.truncf %51 : vector<8x4xf32> to vector<8x4xbf16>
    %c0_33 = arith.constant 0 : index
    %c0_34 = arith.constant 0 : index
    %c20 = arith.constant 20 : index
    %53 = vector.load %arg2[%c0_33, %c0_34, %c20] : memref<1x4x512xbf16, #tpu.memory_space<vmem>>, vector<1x4x384xbf16>
    %54 = vector.shape_cast %53 : vector<1x4x384xbf16> to vector<4x384xbf16>
    %cst_35 = arith.constant dense<0.000000e+00> : vector<8x384xf32>
    %55 = tpu.matmul %52, %54, %cst_35 {dimension_numbers = #tpu.dot_dimension_numbers<[1], [0], [0], [1], [0, 0, 1, 1], [], []>} : vector<8x4xbf16>, vector<4x384xbf16>, vector<8x384xf32> -> vector<8x384xf32>
    %56 = arith.addf %47, %55 : vector<8x384xf32>
    %c6 = arith.constant 6 : index
    %c0_36 = arith.constant 0 : index
    %c0_37 = arith.constant 0 : index
    %57 = vector.load %arg3[%c6, %c0_36, %c0_37] : memref<9x8x4xf32, #tpu.memory_space<vmem>>, vector<1x8x4xf32>
    %58 = vector.shape_cast %57 : vector<1x8x4xf32> to vector<8x4xf32>
    %59 = vector.broadcast %1 : vector<1x4xf32> to vector<8x4xf32>
    %60 = arith.mulf %58, %59 : vector<8x4xf32>
    %61 = arith.truncf %60 : vector<8x4xf32> to vector<8x4xbf16>
    %c0_38 = arith.constant 0 : index
    %c0_39 = arith.constant 0 : index
    %c36 = arith.constant 36 : index
    %62 = vector.load %arg2[%c0_38, %c0_39, %c36] : memref<1x4x512xbf16, #tpu.memory_space<vmem>>, vector<1x4x384xbf16>
    %63 = vector.shape_cast %62 : vector<1x4x384xbf16> to vector<4x384xbf16>
    %cst_40 = arith.constant dense<0.000000e+00> : vector<8x384xf32>
    %64 = tpu.matmul %61, %63, %cst_40 {dimension_numbers = #tpu.dot_dimension_numbers<[1], [0], [0], [1], [0, 0, 1, 1], [], []>} : vector<8x4xbf16>, vector<4x384xbf16>, vector<8x384xf32> -> vector<8x384xf32>
    %65 = arith.addf %56, %64 : vector<8x384xf32>
    %c7 = arith.constant 7 : index
    %c0_41 = arith.constant 0 : index
    %c0_42 = arith.constant 0 : index
    %66 = vector.load %arg3[%c7, %c0_41, %c0_42] : memref<9x8x4xf32, #tpu.memory_space<vmem>>, vector<1x8x4xf32>
    %67 = vector.shape_cast %66 : vector<1x8x4xf32> to vector<8x4xf32>
    %68 = vector.broadcast %1 : vector<1x4xf32> to vector<8x4xf32>
    %69 = arith.mulf %67, %68 : vector<8x4xf32>
    %70 = arith.truncf %69 : vector<8x4xf32> to vector<8x4xbf16>
    %c0_43 = arith.constant 0 : index
    %c0_44 = arith.constant 0 : index
    %c37 = arith.constant 37 : index
    %71 = vector.load %arg2[%c0_43, %c0_44, %c37] : memref<1x4x512xbf16, #tpu.memory_space<vmem>>, vector<1x4x384xbf16>
    %72 = vector.shape_cast %71 : vector<1x4x384xbf16> to vector<4x384xbf16>
    %cst_45 = arith.constant dense<0.000000e+00> : vector<8x384xf32>
    %73 = tpu.matmul %70, %72, %cst_45 {dimension_numbers = #tpu.dot_dimension_numbers<[1], [0], [0], [1], [0, 0, 1, 1], [], []>} : vector<8x4xbf16>, vector<4x384xbf16>, vector<8x384xf32> -> vector<8x384xf32>
    %74 = arith.addf %65, %73 : vector<8x384xf32>
    %c8 = arith.constant 8 : index
    %c0_46 = arith.constant 0 : index
    %c0_47 = arith.constant 0 : index
    %75 = vector.load %arg3[%c8, %c0_46, %c0_47] : memref<9x8x4xf32, #tpu.memory_space<vmem>>, vector<1x8x4xf32>
    %76 = vector.shape_cast %75 : vector<1x8x4xf32> to vector<8x4xf32>
    %77 = vector.broadcast %1 : vector<1x4xf32> to vector<8x4xf32>
    %78 = arith.mulf %76, %77 : vector<8x4xf32>
    %79 = arith.truncf %78 : vector<8x4xf32> to vector<8x4xbf16>
    %c0_48 = arith.constant 0 : index
    %c0_49 = arith.constant 0 : index
    %c38 = arith.constant 38 : index
    %80 = vector.load %arg2[%c0_48, %c0_49, %c38] : memref<1x4x512xbf16, #tpu.memory_space<vmem>>, vector<1x4x384xbf16>
    %81 = vector.shape_cast %80 : vector<1x4x384xbf16> to vector<4x384xbf16>
    %cst_50 = arith.constant dense<0.000000e+00> : vector<8x384xf32>
    %82 = tpu.matmul %79, %81, %cst_50 {dimension_numbers = #tpu.dot_dimension_numbers<[1], [0], [0], [1], [0, 0, 1, 1], [], []>} : vector<8x4xbf16>, vector<4x384xbf16>, vector<8x384xf32> -> vector<8x384xf32>
    %83 = arith.addf %74, %82 : vector<8x384xf32>
    %c0_51 = arith.constant 0 : index
    %c0_52 = arith.constant 0 : index
    %c0_53 = arith.constant 0 : index
    %84 = vector.load %arg5[%c0_51, %c0_52, %c0_53] : memref<1x8x384xf32, #tpu.memory_space<vmem>>, vector<1x8x384xf32>
    %85 = vector.shape_cast %84 : vector<1x8x384xf32> to vector<8x384xf32>
    %86 = vector.shape_cast %83 : vector<8x384xf32> to vector<1x8x384xf32>
    tpu.vector_store %arg5[%c0_51, %c0_52, %c0_53], %86 {strides = array<i32>} : memref<1x8x384xf32, #tpu.memory_space<vmem>>, vector<1x8x384xf32>,
    return
  }
  func.func @transform_0(%arg0: i32, %arg1: i32) -> (i32, i32, i32) {
    %c0_i32 = arith.constant 0 : i32
    %c0_i32_0 = arith.constant 0 : i32
    %c0_i32_1 = arith.constant 0 : i32
    return %arg0, %c0_i32, %c0_i32_0 : i32, i32, i32
  }
  func.func @transform_1(%arg0: i32, %arg1: i32) -> (i32, i32, i32) {
    %c0_i32 = arith.constant 0 : i32
    %c0_i32_0 = arith.constant 0 : i32
    %c0_i32_1 = arith.constant 0 : i32
    return %c0_i32, %arg1, %c0_i32_0 : i32, i32, i32
  }
  func.func @transform_2(%arg0: i32, %arg1: i32) -> (i32, i32, i32) {
    %c0_i32 = arith.constant 0 : i32
    %c0_i32_0 = arith.constant 0 : i32
    %c0_i32_1 = arith.constant 0 : i32
    return %arg0, %c0_i32, %c0_i32_0 : i32, i32, i32
  }
  func.func @transform_3(%arg0: i32, %arg1: i32) -> (i32, i32, i32) {
    %c0_i32 = arith.constant 0 : i32
    %c0_i32_0 = arith.constant 0 : i32
    return %arg0, %arg1, %c0_i32 : i32, i32, i32
  }
}

</mosaic_0001>

<bundles_post_ra>
// kernel: tpu_custom_call.1
= control target key start
LH: loop header
LB: loop body
LE: loop exit
PB: predicated region body
PF: predicated region fallthrough
CT: control target
= control target key end

     0   :  { %8 = vsyncpa [#allocation3], 0  ;;  %s2132_s0 = inlined_call_operand.vmem [shape: bf16[2,4,512], index: 0, kind: input, shape index: {}]   ;;  %s2133_s1 = inlined_call_operand.vmem [shape: f32[9,8,4], index: 1, kind: input, shape index: {}]   ;;  %s2134_s2 = inlined_call_operand.vmem [shape: f32[2,1,4], index: 2, kind: input, shape index: {}]   ;;  %s2135_s3 = inlined_call_operand.hbm [shape: f32[2,8,384], index: 3, kind: output, shape index: {}]  }
   0x1   :  { %10 = vsyncpa [#allocation3 + $0x1], 0  ;;  %s1865_s12 = smov 0   ;;  %s1867_s13 = smov 0  }
   0x2   :  { %s1869_s14 = smov 0   ;;  %s1871_s15 = smov 0  }
   0x3   :  { %s1873_s16 = smov 0   ;;  %s1875_s17 = smov 0  }
   0x4 LB: > { %s1497_s18 = sadd.s32 4294967295, %s1830_s17   ;;  %s1498_s19 = sadd.s32 4294967294, %s1830_s17   ;;  %s1830_s17 = sphi %s1875_s17, %s16_s17   ;;  %s1826_s16 = sphi %s1873_s16, %s2142_s16   ;;  %s1822_s15 = sphi %s1871_s15, %s2141_s15   ;;  %s1818_s14 = sphi %s1869_s14, %s2140_s14   ;;  %s1814_s13 = sphi %s1867_s13, %s2139_s13   ;;  %s1810_s12 = sphi %s1865_s12, %s2138_s12  }
   0x5   : > { %s28_s20 = sadd.s32 1, %s1826_s16  ;;  %s115_s21 = sadd.s32 1, %s1818_s14 }
   0x6   : > { %p30_p0 = scmp.ge.s32.totalorder %s28_s20, 2  ;;  %p125_p1 = scmp.ne.s32.totalorder %s1818_s14, %s1814_s13 }
   0x7   : > { %p126_p2 = scmp.eq.s32.totalorder %s1497_s18, 1  ;;  %p131_p3 = scmp.ne.s32.totalorder %s1814_s13, %s1810_s12 }
   0x8   : > { %s2144_s20 = smov (%p30_p0, %s28_s20), 0  ;;  %p132_p5 = scmp.eq.s32.totalorder %s1498_s19, 1 }
   0x9   : > { %p1905_p4 = por %p126_p2, %p125_p1  ;;  %s110_s23 = ssub.s32 %s1826_s16, %s2144_s20 }
   0xa   : > { %p1502_p6 = scmp.ge.s32.totalorder %s1830_s17, 1  ;;  %p113_p7 = scmp.eq.s32.totalorder %s110_s23, 0 }
   0xb   : > { %p1912_p8 = por %p132_p5, %p131_p3  ;;  %p171_p9 = scmp.lt.s32.totalorder %s1830_s17, 3 }
   0xc   : > { %s1918_s25 = scalar_select %p113_p7, %s1818_s14, %s115_s21  }
   0xd   : > { %p172_p10 = pnand %p1502_p6, %p171_p9 }
   0xe   : > { %p202_p11 = scmp.lt.s32.totalorder (!%p172_p10), %s1822_s15, 1  ;;  %v236_v0 = vlaneseq (!%p172_p10)  ;;  %v1832_v1 = vmov (!%p172_p10), 1983009808   ;;  %v1833_v5 = vmov (!%p172_p10), 0.0   ;;  %v1834_v6 = vmov (!%p172_p10), 0   ;;  %s1836_s4 = smov (!%p172_p10), 127  }
   0xf   : > { %175 = sbr.rel (%p172_p10) target bundleno = 478 (0x1de), region = 32  ;;  %v234_v2 = vunpack.c.l.s4 (!%p172_p10), %v1832_v1  ;;  %1563 = vmatprep.subr.bf16.mxu1 (!%p172_p10), %v1833_v5  ;;  %307 = vmatprep.mubr.bf16.mxu0 (!%p172_p10), %v1834_v6  ;;  %vm1835_vm0 = vmmov (!%p172_p10), 0   ;;  %s1837_s5 = smov (!%p172_p10), 126   ;;  %v1506_v19 = vld [vmem:[%s2133_s1 + $0x8] sm:$0xff] (!%p172_p10)  ;;  %vm257_vm1 = vcmask (!%p172_p10), 1039360   ;;  %vm265_vm2 = vcmask (!%p172_p10), 1041408  }
  0x10   : > { %v237_v3 = vshrl.u32 (!%p172_p10), %v236_v0, 7  ;;  %1565 = vmatprep.mubr.msk.bf16.mxu1 (!%p172_p10), %vm1835_vm0, %v1833_v5  ;;  %s1838_s6 = smov (!%p172_p10), 110   ;;  %s1839_s7 = smov (!%p172_p10), 109   ;;  %vm261_vm3 = vcmask (!%p172_p10), 31744   ;;  %vm497_vm4 = vcmask (!%p172_p10), 1031168   ;;  %v216_v36 = vld [vmem:[%s2133_s1] sm:$0xff] (!%p172_p10) }
  0x11   : > { %v235_v4 = vunpack.c.0.s8 (!%p172_p10), %v234_v2  ;;  %s1840_s8 = smov (!%p172_p10), 108   ;;  %s1841_s9 = smov (!%p172_p10), 92   ;;  %vm628_vm5 = vcmask (!%p172_p10), 900096   ;;  %v1513_v50 = vld [vmem:[%s2133_s1 + $0x10] sm:$0xff] (!%p172_p10)  ;;  %vm759_vm6 = vcmask (!%p172_p10), 891904   ;;  %v1517_v62 = vld [vmem:[%s2133_s1 + $0x18] sm:$0xff] (!%p172_p10) }
  0x12   : > { %s1842_s10 = smov (!%p172_p10), 91   ;;  %s1843_s11 = smov (!%p172_p10), 90   ;;  %vm890_vm7 = vcmask (!%p172_p10), 883712   ;;  %vm1021_vm8 = vcmask (!%p172_p10), 752640   ;;  %vm1152_vm9 = vcmask (!%p172_p10), 744448   ;;  %vm1283_vm10 = vcmask (!%p172_p10), 736256  }
  0x13   : > { %v238_v7 = vsub.s32 (!%p172_p10), %v235_v4, %v237_v3  ;;  %s1682_s28 = smul.u32 (!%p172_p10), 384, %s1822_s15 }
  0x16   : > { %s1922_s26 = scalar_select %p202_p11, %s1822_s15, 1 }
  0x18   : > { %s1544_s27 = sshll.u32 %s1922_s26, 3  ;;  %s213_s21 = scalar_lea.vmem %s2134_s2, %s1922_s26 }
  0x19   : > { %s206_s30 = scalar_lea.vmem %s2132_s0, %s1544_s27  ;;  %v1940_v18 = vld [vmem:[%s213_s21] ss:$0 sm:$0xff]  ;;  %s199_s27 = sand.u32 1, %s1814_s13  }
  0x1a   : > { %v230_v8 = vld [vmem:[%s206_s30] sm:$0xff]  ;;  %v228_v22 = vmul.f32 %v1506_v19, %v1940_v18  ;;  %v223_v40 = vmul.f32 %v1940_v18, %v216_v36  ;;  %v468_v53 = vmul.f32 %v1513_v50, %v1940_v18  ;;  %v599_v1 = vmul.f32 %v1517_v62, %v1940_v18  ;;  %s1681_s26 = smul.u32 24, %s199_s27  ;;  %s1387_s15 = scalar_lea.sflag [#allocation3], %s199_s27 }
  0x1b   : > { %v239_v9 = vrot.slane %v230_v8, %v238_v7  ;;  %v232_v10 = vcombine.high %v230_v8, %v230_v8  ;;  %v225_v11 = vld [vmem:[%s206_s30] sm:$0x3f] }
  0x1c   : > { %v1932_v12 = vrot.slane %v225_v11, %v238_v7  ;;  %v357_v13 = vcombine.high %v225_v11, %v225_v11  ;;  %v229_v29 = vpack.c.bf16 %v228_v22, %v228_v22  ;;  %v224_v43 = vpack.c.bf16 %v223_v40, %v223_v40  ;;  %s201_s29 = scalar_lea.vmem [#allocation2], %s1681_s26 }
  0x1d   : > { %249 = vrot.lane.b32.xlu0 %v239_v9, %s1836_s4  ;;  %v247_v14 = vcombine.high %v239_v9, %v239_v9  ;;  %v246_v15 = vrot.slane %v232_v10, %v238_v7  ;;  %v469_v55 = vpack.c.bf16 %v468_v53, %v468_v53  ;;  %v600_v3 = vpack.c.bf16 %v599_v1, %v599_v1  ;;  %s1403_s30 = sshll.u32 %s201_s29, 4  ;;  %s2087_s30 = int_to_ptr.vmem [resolvable:$true] %s1403_s30 }
  0x1e   : > { %v1934_v16 = vrot.slane %v357_v13, %v238_v7  ;;  %v372_v24 = vcombine.high %v1932_v12, %v1932_v12  ;;  %v377_v32 = vsel %vm265_vm2, %v1932_v12, 0  ;;  %v1521_v12 = vld [vmem:[%s2133_s1 + $0x20] sm:$0xff] }
  0x1f   : > { %253 = vrot.lane.b32.xlu1 %v246_v15, %s1836_s4  ;;  %v248_v17 = vcombine.high %v246_v15, %v246_v15 }
  0x20   : > { %v383_v34 = vsel %vm265_vm2, %v1934_v16, 0 }
  0x21   : > { %251 = vrot.lane.b32.xlu0 %v247_v14, %s1836_s4 }
  0x23   : > { %255 = vrot.lane.b32.xlu1 %v248_v17, %s1836_s4 }
  0x25   : > { %489 = vrot.lane.b32.xlu0 %v239_v9, %s1837_s5 }
  0x27   : > { %491 = vrot.lane.b32.xlu1 %v247_v14, %s1837_s5 }
  0x29   : > { %493 = vrot.lane.b32.xlu0 %v246_v15, %s1837_s5 }
  0x2b   : > { %495 = vrot.lane.b32.xlu1 %v248_v17, %s1837_s5 }
  0x2d   : > { %620 = vrot.lane.b32.xlu0 %v239_v9, %s1838_s6 }
  0x2f   : > { %622 = vrot.lane.b32.xlu1 %v247_v14, %s1838_s6 }
  0x31   : > { %624 = vrot.lane.b32.xlu0 %v246_v15, %s1838_s6 }
  0x33   : > { %626 = vrot.lane.b32.xlu1 %v248_v17, %s1838_s6  ;;  %s2085_s6 = scalar_lea.hbm %s2135_s3, %s1682_s28 }
  0x35   : > { %751 = vrot.lane.b32.xlu0 %v239_v9, %s1839_s7 }
  0x37   : > { %753 = vrot.lane.b32.xlu1 %v247_v14, %s1839_s7 }
  0x39   : > { %755 = vrot.lane.b32.xlu0 %v246_v15, %s1839_s7 }
  0x3b   : > { %757 = vrot.lane.b32.xlu1 %v248_v17, %s1839_s7  ;;  %s1752_s7 = scalar_lea.vmem %s2087_s30, 384 }
  0x3c   : > { %p1753_p12 = scmp.ne.s32.totalorder %s2087_s30, %s1752_s7 }
  0x3d   : > { %882 = vrot.lane.b32.xlu0 %v239_v9, %s1840_s8 }
  0x3e   : > { %p1754_p13 = pnand %p1753_p12, %p1905_p4 }
  0x3f   : > { %884 = vrot.lane.b32.xlu1 %v247_v14, %s1840_s8 }
  0x40   : > { %p1755_p0 = pneg %p1754_p13 }
  0x41   : > { %886 = vrot.lane.b32.xlu0 %v246_v15, %s1840_s8 }
  0x43   : > { %888 = vrot.lane.b32.xlu1 %v248_v17, %s1840_s8  ;;  %s1844_s8 = smov [#allocation2]  }
  0x45   : > { %1013 = vrot.lane.b32.xlu0 %v239_v9, %s1841_s9 }
  0x47   : > { %1015 = vrot.lane.b32.xlu1 %v247_v14, %s1841_s9 }
  0x49   : > { %1017 = vrot.lane.b32.xlu0 %v246_v15, %s1841_s9 }
  0x4b   : > { %1019 = vrot.lane.b32.xlu1 %v248_v17, %s1841_s9  ;;  %s1756_s9 = sshll.u32 %s1844_s8, 4  ;;  %s1757_s9 = int_to_ptr.vmem [resolvable:$false] %s1756_s9 }
  0x4c   : > { %p1759_p1 = scmp.lt.s32.totalorder %s2087_s30, %s1757_s9 }
  0x4d   : > { %1144 = vrot.lane.b32.xlu0 %v239_v9, %s1842_s10 }
  0x4f   : > { %1146 = vrot.lane.b32.xlu1 %v247_v14, %s1842_s10 }
  0x51   : > { %1148 = vrot.lane.b32.xlu0 %v246_v15, %s1842_s10 }
  0x53   : > { %1150 = vrot.lane.b32.xlu1 %v248_v17, %s1842_s10  ;;  %s1758_s10 = scalar_lea.vmem %s1757_s9, 768 }
  0x54   : > { %p1760_p2 = scmp.lt.s32.totalorder %s1758_s10, %s1752_s7 }
  0x55   : > { %1275 = vrot.lane.b32.xlu0 %v239_v9, %s1843_s11 }
  0x56   : > { %p1761_p3 = por %p1760_p2, %p1759_p1 }
  0x57   : > { %1277 = vrot.lane.b32.xlu1 %v247_v14, %s1843_s11 }
  0x58   : > { %p1762_p5 = pnand %p1761_p3, %p1755_p0 }
  0x59   : > { %1279 = vrot.lane.b32.xlu0 %v246_v15, %s1843_s11  ;;  %v730_v15 = vmul.f32 %v1521_v12, %v1940_v18 }
  0x5b   : > { %1281 = vrot.lane.b32.xlu1 %v248_v17, %s1843_s11  ;;  %v731_v17 = vpack.c.bf16 %v730_v15, %v730_v15 }
  0x8f   : > { %v250_v20 = vpop.permute.xlu0 %249 }
  0x91   : > { %v254_v21 = vpop.permute.xlu1 %253 }
  0x93   : > { %v252_v23 = vpop.permute.xlu0 %251 }
  0x94   : > { %v259_v25 = vsel %vm257_vm1, %v252_v23, %v254_v21  ;;  %v258_v26 = vsel %vm257_vm1, %v250_v20, %v252_v23 }
  0x95   : > { %1507 = vmatprep.subr.msk.bf16.mxu0 %vm265_vm2, %v259_v25  ;;  %v256_v27 = vpop.permute.xlu1 %255  ;;  %v267_v28 = vsel %vm265_vm2, %v258_v26, 0  ;;  %v1525_v25 = vld [vmem:[%s2133_s1 + $0x28] sm:$0xff] }
  0x96   : > { %276 = vmatpush1.bf16.msra.mxu0 %v267_v28  ;;  %v260_v30 = vsel %vm257_vm1, %v254_v21, %v256_v27  ;;  %v861_v28 = vmul.f32 %v1525_v25, %v1940_v18 }
  0x97   : > { %v273_v31 = vsel %vm265_vm2, %v260_v30, 0  ;;  %1510 = vmatprep.subr.msk.bf16.mxu0 %vm265_vm2, %v372_v24  ;;  %v490_v33 = vpop.permute.xlu0 %489 }
  0x98   : > { %1564 = vmatpush3.bf16.msra.mxu1 %v273_v31  ;;  %v862_v30 = vpack.c.bf16 %v861_v28, %v861_v28 }
  0x99   : > { %1508 = vmatmul.mubr.msk.bf16.vlgmr.msra.gmra.mrb[0].mxu0 %vm261_vm3, %v229_v29  ;;  %1569 = vmatprep.subr.bf16.mxu1 %v1833_v5  ;;  %v492_v35 = vpop.permute.xlu1 %491 }
  0x9a   : > { %386 = vmatpush1.bf16.msra.mxu0 %v377_v32  ;;  %417 = vmatprep.mubr.bf16.mxu0 %v1834_v6  ;;  %v498_v42 = vsel %vm497_vm4, %v490_v33, %v492_v35 }
  0x9b   : > { %1566 = vmatmul.mubr.msk.bf16.vlgmr.msra.gmra.mrb[0].mxu1 %vm261_vm3, %v229_v29  ;;  %v494_v37 = vpop.permute.xlu0 %493  ;;  %v505_v46 = vsel %vm265_vm2, %v498_v42, 0 }
  0x9c   : > { %1570 = vmatpush3.bf16.msra.mxu1 %v383_v34  ;;  %v499_v38 = vsel %vm497_vm4, %v492_v35, %v494_v37  ;;  %1571 = vmatprep.mubr.msk.bf16.mxu1 %vm1835_vm0, %v1833_v5 }
  0x9d   : > { %1514 = vmatprep.subr.msk.bf16.mxu0 %vm265_vm2, %v499_v38  ;;  %v496_v39 = vpop.permute.xlu1 %495  ;;  %1575 = vmatprep.subr.bf16.mxu1 %v1833_v5 }
  0x9e   : > { %v500_v45 = vsel %vm497_vm4, %v494_v37, %v496_v39  ;;  %v1529_v37 = vld [vmem:[%s2133_s1 + $0x30] sm:$0xff] }
  0x9f   : > { %v621_v41 = vpop.permute.xlu0 %620  ;;  %v511_v49 = vsel %vm265_vm2, %v500_v45, 0  ;;  %v992_v40 = vmul.f32 %v1529_v37, %v1940_v18 }
  0xa1   : > { %v623_v44 = vpop.permute.xlu1 %622  ;;  %v993_v42 = vpack.c.bf16 %v992_v40, %v992_v40 }
  0xa2   : > { %v629_v54 = vsel %vm628_vm5, %v621_v41, %v623_v44 }
  0xa3   : > { %v625_v47 = vpop.permute.xlu0 %624  ;;  %v636_v59 = vsel %vm265_vm2, %v629_v54, 0 }
  0xa4   : > { %v630_v48 = vsel %vm628_vm5, %v623_v44, %v625_v47 }
  0xa5   : > { %1511 = vmatmul.mubr.msk.bf16.vlgmr.msra.gmra.mrb[0].mxu0 %vm261_vm3, %v224_v43  ;;  %v627_v52 = vpop.permute.xlu1 %626 }
  0xa6   : > { %514 = vmatpush1.bf16.msra.mxu0 %v505_v46  ;;  %545 = vmatprep.mubr.bf16.mxu0 %v1834_v6  ;;  %v631_v58 = vsel %vm628_vm5, %v625_v47, %v627_v52 }
  0xa7   : > { %1572 = vmatmul.mubr.msk.bf16.vlgmr.msra.gmra.mrb[0].mxu1 %vm261_vm3, %v224_v43  ;;  %1518 = vmatprep.subr.msk.bf16.mxu0 %vm265_vm2, %v630_v48  ;;  %v752_v51 = vpop.permute.xlu0 %751  ;;  %v642_v61 = vsel %vm265_vm2, %v631_v58, 0 }
  0xa8   : > { %1576 = vmatpush3.bf16.msra.mxu1 %v511_v49  ;;  %1577 = vmatprep.mubr.msk.bf16.mxu1 %vm1835_vm0, %v1833_v5  ;;  %v1533_v49 = vld [vmem:[%s2133_s1 + $0x38] sm:$0xff] }
  0xa9   : > { %1581 = vmatprep.subr.bf16.mxu1 %v1833_v5  ;;  %v754_v57 = vpop.permute.xlu1 %753  ;;  %v1123_v50 = vmul.f32 %v1533_v49, %v1940_v18 }
  0xaa   : > { %v760_v2 = vsel %vm759_vm6, %v752_v51, %v754_v57 }
  0xab   : > { %v756_v56 = vpop.permute.xlu0 %755  ;;  %v767_v9 = vsel %vm265_vm2, %v760_v2, 0  ;;  %v1124_v53 = vpack.c.bf16 %v1123_v50, %v1123_v50 }
  0xac   : > { %v761_v60 = vsel %vm759_vm6, %v754_v57, %v756_v56  ;;  %v1537_v57 = vld [vmem:[%s2133_s1 + $0x40] sm:$0xff] }
  0xad   : > { %v758_v0 = vpop.permute.xlu1 %757  ;;  %v1254_v58 = vmul.f32 %v1537_v57, %v1940_v18 }
  0xae   : > { %v762_v8 = vsel %vm759_vm6, %v756_v56, %v758_v0 }
  0xaf   : > { %v883_v63 = vpop.permute.xlu0 %882  ;;  %v773_v11 = vsel %vm265_vm2, %v762_v8, 0 }
  0xb1   : > { %1515 = vmatmul.mubr.msk.bf16.vlgmr.msra.gmra.mrb[0].mxu0 %vm261_vm3, %v469_v55  ;;  %v885_v7 = vpop.permute.xlu1 %884 }
  0xb2   : > { %645 = vmatpush1.bf16.msra.mxu0 %v636_v59  ;;  %676 = vmatprep.mubr.bf16.mxu0 %v1834_v6  ;;  %v891_v16 = vsel %vm890_vm7, %v883_v63, %v885_v7  ;;  %v1255_v59 = vpack.c.bf16 %v1254_v58, %v1254_v58 }
  0xb3   : > { %1578 = vmatmul.mubr.msk.bf16.vlgmr.msra.gmra.mrb[0].mxu1 %vm261_vm3, %v469_v55  ;;  %1522 = vmatprep.subr.msk.bf16.mxu0 %vm265_vm2, %v761_v60  ;;  %v887_v4 = vpop.permute.xlu0 %886  ;;  %v898_v22 = vsel %vm265_vm2, %v891_v16, 0 }
  0xb4   : > { %1582 = vmatpush3.bf16.msra.mxu1 %v642_v61  ;;  %1583 = vmatprep.mubr.msk.bf16.mxu1 %vm1835_vm0, %v1833_v5  ;;  %v892_v10 = vsel %vm890_vm7, %v885_v7, %v887_v4 }
  0xb5   : > { %1587 = vmatprep.subr.bf16.mxu1 %v1833_v5  ;;  %v889_v14 = vpop.permute.xlu1 %888 }
  0xb6   : > { %v893_v21 = vsel %vm890_vm7, %v887_v4, %v889_v14 }
  0xb7   : > { %v1014_v13 = vpop.permute.xlu0 %1013  ;;  %v904_v24 = vsel %vm265_vm2, %v893_v21, 0 }
  0xb9   : > { %v1016_v20 = vpop.permute.xlu1 %1015 }
  0xba   : > { %v1022_v29 = vsel %vm1021_vm8, %v1014_v13, %v1016_v20 }
  0xbb   : > { %v1018_v19 = vpop.permute.xlu0 %1017  ;;  %v1029_v34 = vsel %vm265_vm2, %v1022_v29, 0 }
  0xbc   : > { %v1023_v23 = vsel %vm1021_vm8, %v1016_v20, %v1018_v19 }
  0xbd   : > { %1519 = vmatmul.mubr.msk.bf16.vlgmr.msra.gmra.mrb[0].mxu0 %vm261_vm3, %v600_v3  ;;  %v1020_v27 = vpop.permute.xlu1 %1019 }
  0xbe   : > { %776 = vmatpush1.bf16.msra.mxu0 %v767_v9  ;;  %807 = vmatprep.mubr.bf16.mxu0 %v1834_v6  ;;  %v1024_v33 = vsel %vm1021_vm8, %v1018_v19, %v1020_v27 }
  0xbf   : > { %1584 = vmatmul.mubr.msk.bf16.vlgmr.msra.gmra.mrb[0].mxu1 %vm261_vm3, %v600_v3  ;;  %1526 = vmatprep.subr.msk.bf16.mxu0 %vm265_vm2, %v892_v10  ;;  %v1145_v26 = vpop.permute.xlu0 %1144  ;;  %v1035_v36 = vsel %vm265_vm2, %v1024_v33, 0 }
  0xc0   : > { %1588 = vmatpush3.bf16.msra.mxu1 %v773_v11  ;;  %1589 = vmatprep.mubr.msk.bf16.mxu1 %vm1835_vm0, %v1833_v5 }
  0xc1   : > { %1593 = vmatprep.subr.bf16.mxu1 %v1833_v5  ;;  %v1147_v32 = vpop.permute.xlu1 %1146 }
  0xc2   : > { %v1153_v41 = vsel %vm1152_vm9, %v1145_v26, %v1147_v32 }
  0xc3   : > { %v1149_v31 = vpop.permute.xlu0 %1148  ;;  %v1160_v46 = vsel %vm265_vm2, %v1153_v41, 0 }
  0xc4   : > { %v1154_v35 = vsel %vm1152_vm9, %v1147_v32, %v1149_v31 }
  0xc5   : > { %v1151_v39 = vpop.permute.xlu1 %1150 }
  0xc6   : > { %v1155_v45 = vsel %vm1152_vm9, %v1149_v31, %v1151_v39 }
  0xc7   : > { %v1276_v38 = vpop.permute.xlu0 %1275  ;;  %v1166_v48 = vsel %vm265_vm2, %v1155_v45, 0 }
  0xc9   : > { %1523 = vmatmul.mubr.msk.bf16.vlgmr.msra.gmra.mrb[0].mxu0 %vm261_vm3, %v731_v17  ;;  %v1278_v44 = vpop.permute.xlu1 %1277 }
  0xca   : > { %907 = vmatpush1.bf16.msra.mxu0 %v898_v22  ;;  %938 = vmatprep.mubr.bf16.mxu0 %v1834_v6  ;;  %v1284_v52 = vsel %vm1283_vm10, %v1276_v38, %v1278_v44 }
  0xcb   : > { %1590 = vmatmul.mubr.msk.bf16.vlgmr.msra.gmra.mrb[0].mxu1 %vm261_vm3, %v731_v17  ;;  %1530 = vmatprep.subr.msk.bf16.mxu0 %vm265_vm2, %v1023_v23  ;;  %v1280_v43 = vpop.permute.xlu0 %1279  ;;  %v1291_v55 = vsel %vm265_vm2, %v1284_v52, 0 }
  0xcc   : > { %1594 = vmatpush3.bf16.msra.mxu1 %v904_v24  ;;  %1595 = vmatprep.mubr.msk.bf16.mxu1 %vm1835_vm0, %v1833_v5  ;;  %v1285_v47 = vsel %vm1283_vm10, %v1278_v44, %v1280_v43 }
  0xcd   : > { %1599 = vmatprep.subr.bf16.mxu1 %v1833_v5  ;;  %v1282_v51 = vpop.permute.xlu1 %1281 }
  0xce   : > { %v1286_v54 = vsel %vm1283_vm10, %v1280_v43, %v1282_v51 }
  0xcf   : > { %v1297_v56 = vsel %vm265_vm2, %v1286_v54, 0 }
  0xd5   : > { %1527 = vmatmul.mubr.msk.bf16.vlgmr.msra.gmra.mrb[0].mxu0 %vm261_vm3, %v862_v30 }
  0xd6   : > { %1038 = vmatpush1.bf16.msra.mxu0 %v1029_v34  ;;  %1069 = vmatprep.mubr.bf16.mxu0 %v1834_v6 }
  0xd7   : > { %1596 = vmatmul.mubr.msk.bf16.vlgmr.msra.gmra.mrb[0].mxu1 %vm261_vm3, %v862_v30  ;;  %1534 = vmatprep.subr.msk.bf16.mxu0 %vm265_vm2, %v1154_v35 }
  0xd8   : > { %1600 = vmatpush3.bf16.msra.mxu1 %v1035_v36  ;;  %1601 = vmatprep.mubr.msk.bf16.mxu1 %vm1835_vm0, %v1833_v5 }
  0xd9   : > { %1605 = vmatprep.subr.bf16.mxu1 %v1833_v5 }
  0xe1   : > { %1531 = vmatmul.mubr.msk.bf16.vlgmr.msra.gmra.mrb[0].mxu0 %vm261_vm3, %v993_v42 }
  0xe2   : > { %1169 = vmatpush1.bf16.msra.mxu0 %v1160_v46  ;;  %1200 = vmatprep.mubr.bf16.mxu0 %v1834_v6 }
  0xe3   : > { %1602 = vmatmul.mubr.msk.bf16.vlgmr.msra.gmra.mrb[0].mxu1 %vm261_vm3, %v993_v42  ;;  %1538 = vmatprep.subr.msk.bf16.mxu0 %vm265_vm2, %v1285_v47 }
  0xe4   : > { %1606 = vmatpush3.bf16.msra.mxu1 %v1166_v48  ;;  %1607 = vmatprep.mubr.msk.bf16.mxu1 %vm1835_vm0, %v1833_v5 }
  0xe5   : > { %1611 = vmatprep.subr.bf16.mxu1 %v1833_v5 }
  0xed   : > { %1535 = vmatmul.mubr.msk.bf16.vlgmr.msra.gmra.mrb[0].mxu0 %vm261_vm3, %v1124_v53 }
  0xee   : > { %1300 = vmatpush1.bf16.msra.mxu0 %v1291_v55  ;;  %1331 = vmatprep.mubr.bf16.mxu0 %v1834_v6 }
  0xef   : > { %1608 = vmatmul.mubr.msk.bf16.vlgmr.msra.gmra.mrb[0].mxu1 %vm261_vm3, %v1124_v53 }
  0xf0   : > { %1612 = vmatpush3.bf16.msra.mxu1 %v1297_v56  ;;  %1613 = vmatprep.mubr.msk.bf16.mxu1 %vm1835_vm0, %v1833_v5 }
  0xf9   : > { %1539 = vmatmul.mubr.msk.bf16.vlgmr.msra.gmra.mrb[0].mxu0 %vm261_vm3, %v1255_v59 }
  0xfb   : > { %1614 = vmatmul.mubr.msk.bf16.vlgmr.msra.gmra.mrb[0].mxu1 %vm261_vm3, %v1255_v59 }
 0x1cc   : > { %v1333_v6 = vpop.f32.mrb[0].mxu0 }
 0x1cd   : > { %1383 = vst [vmem:[%s201_s29] sm:$0xff] %v1333_v6  ;;  %v1335_v60 = vpop.f32.mrb[1].mxu0 }
 0x1ce   : > { %1384 = vst [vmem:[%s201_s29 + $0x8] sm:$0xff] %v1335_v60  ;;  %v1337_v5 = vpop.f32.mrb[2].mxu0  ;;  %v1374_v18 = vpop.f32.mrb[0].mxu1 }
 0x1cf   : > { %1385 = vst [vmem:[%s201_s29 + $0x10] sm:$0xff] %v1374_v18  ;;  %v1338_v61 = vpop.f32.mrb[3].mxu0  ;;  %v1615_v62 = vpop.f32.mrb[1].mxu1 }
 0x1d0   : > { %v1377_v63 = vpop.f32.mrb[2].mxu1 }
 0x1d1   : > { %1765 = shalt.err (!%p1762_p5)
}
 0x1d2   : > { %s1766_s11 = scalar_lea.hbm %s2085_s6, 384  ;;  %s1770_s21 = scalar_lea.hbm %s2135_s3, 768 }
 0x1d3   : > { %p1767_p6 = scmp.ne.s32.totalorder %s2085_s6, %s1766_s11  ;;  %p1771_p10 = scmp.lt.u32.totalorder %s2085_s6, %s2135_s3 }
 0x1d4   : > { %p1772_p11 = scmp.lt.u32.totalorder %s1770_s21, %s1766_s11  ;;  %p1774_p13 = scmp.lt.u32.totalorder %s1766_s11, %s2085_s6 }
 0x1d5   : > { %p1768_p7 = pnand %p1767_p6, %p1905_p4 }
 0x1d6   : > { %p1773_p12 = por %p1772_p11, %p1771_p10 }
 0x1d7   : > { %p1769_p9 = pneg %p1768_p7 }
 0x1d8   : > { %p1775_p0 = por %p1774_p13, %p1773_p12 }
 0x1da   : > { %p1776_p1 = pnand %p1775_p0, %p1769_p9 }
 0x1dc   : > { %1779 = shalt.err (!%p1776_p1)
}
 0x1dd   : > { %1683 = dma.vmem_to_hbm [thread:$0]  (%p1905_p4), %s2087_s30, 384, %s2085_s6, %s1387_s15   ;;  %v1616_v0 = vpop.f32.mrb[3].mxu1 }
 0x1de PF: > { %p1689_p2 = scmp.ge.s32.totalorder %s1830_s17, 2  ;;  %s1415_s26 = sand.u32 1, %s1810_s12  }
 0x1df   : > { %s1416_s28 = scalar_lea.sflag [#allocation3], %s1415_s26 }
 0x1e0   : > { %p1686_p3 = pnand %p1689_p2, %p1912_p8 }
 0x1e2   : > { %1805 = dma.done.wait (!%p1686_p3), %s1416_s28, 384  }
 0x1e3   : > { %1807 = vsyncadd (!%p1686_p3), %s1416_s28, 4294966912  ;;  %s16_s17 = sadd.s32 1, %s1830_s17   ;;  %s2138_s12 = smov %s1814_s13 }
 0x1e4   : > { %p13_p5 = scmp.ge.s32.totalorder %s16_s17, 4   ;;  %s2139_s13 = smov %s1818_s14 }
 0x1e5   : > { %s2140_s14 = smov %s1918_s25  ;;  %s2141_s15 = smov %s1826_s16 }
 0x1e6   : > { %s2142_s16 = smov %s2144_s20  ;;  %15 = sbr.rel (!%p13_p5) target bundleno = 4 (0x4), region = 81 }
 0x1ed   :  { %1421 = vsyncpa [#allocation3], 1 }
 0x1ee   :  { %1423 = vsyncpa [#allocation3 + $0x1], 1 }

</bundles_post_ra>
